<compile_context>
chip_gen: v5e
topology: v5e:2x2
jax: 0.10.0
libtpu: 0.0.40
codegen_flags: <defaults>
</compile_context>

<pallas_src>
import math

import jax
import jax.numpy as jnp
from jax.experimental import pallas as pl
from jax.experimental.pallas import tpu as pltpu

LANE = 128
VMEM_LIMIT_BYTES = 48 * 1024 * 1024    # safe on v5e/v6e (128 MiB) and v7x (64 MiB)
FUSED_VMEM_BUDGET = 36 * 1024 * 1024   # conservative bound for the resident-A path


def _round_up(x, m):
    return ((x + m - 1) // m) * m


def _pad2d(x, rows, cols):
    return jnp.pad(x, ((0, rows - x.shape[0]), (0, cols - x.shape[1])))


def _largest_divisor_tile(n, candidates):
    for t in candidates:
        if n % t == 0:
            return t
    return LANE


# ------------------------------------------------------------------ kernels

def _transform_kernel(x_ref, w_ref, o_ref):
    # o = x @ w   (bf16 operands, f32 MXU accumulation, bf16 result)
    o_ref[...] = jnp.dot(
        x_ref[...], w_ref[...], preferred_element_type=jnp.float32
    ).astype(o_ref.dtype)


def _fused3_kernel(a_ref, xw1_ref, w2_ref, w3_ref, b1_ref, b2_ref, b3_ref, o_ref):
    # Entire 3-layer propagation with A_hat resident in VMEM (loaded once).
    #   h1  = relu(A @ XW1 + b1');  xw2 = h1 @ W2'
    #   h2  = relu(A @ xw2 + b2');  xw3 = h2 @ W3
    #   out = A @ xw3 + b3
    # Padded rows of A are zero -> padded-row garbage (relu(bias)) never leaks
    # back into real rows; the wrapper slices it off.
    bf = jnp.bfloat16
    a = a_ref[...]
    h1 = jnp.maximum(
        jnp.dot(a, xw1_ref[...], preferred_element_type=jnp.float32) + b1_ref[...],
        0.0)
    xw2 = jnp.dot(h1.astype(bf), w2_ref[...],
                  preferred_element_type=jnp.float32).astype(bf)
    h2 = jnp.maximum(
        jnp.dot(a, xw2, preferred_element_type=jnp.float32) + b2_ref[...], 0.0)
    xw3 = jnp.dot(h2.astype(bf), w3_ref[...],
                  preferred_element_type=jnp.float32).astype(bf)
    o_ref[...] = jnp.dot(a, xw3, preferred_element_type=jnp.float32) + b3_ref[...]


def _prop_fused_kernel(a_ref, xw_ref, b_ref, wn_ref, o_ref, acc_ref):
    # Streaming path.  XW is VMEM-resident for the whole call; the A row/col
    # tile is the only re-streamed operand.
    # acc += A[i,k] @ XW[k]; at k == last: o = relu(acc + b) @ W_next
    k = pl.program_id(1)
    tk = a_ref.shape[1]

    @pl.when(k == 0)
    def _():
        acc_ref[...] = jnp.zeros_like(acc_ref)

    start = pl.multiple_of(k * tk, tk)
    acc_ref[...] += jnp.dot(a_ref[...], xw_ref[pl.ds(start, tk), :],
                            preferred_element_type=jnp.float32)

    @pl.when(k == pl.num_programs(1) - 1)
    def _():
        h = jnp.maximum(acc_ref[...] + b_ref[...], 0.0)
        o_ref[...] = jnp.dot(
            h.astype(jnp.bfloat16), wn_ref[...],
            preferred_element_type=jnp.float32).astype(o_ref.dtype)


def _prop_final_kernel(a_ref, xw_ref, b_ref, o_ref, acc_ref):
    # acc += A[i,k] @ XW[k]; at k == last: o = acc + b  (layer 3: no ReLU)
    k = pl.program_id(1)
    tk = a_ref.shape[1]

    @pl.when(k == 0)
    def _():
        acc_ref[...] = jnp.zeros_like(acc_ref)

    start = pl.multiple_of(k * tk, tk)
    acc_ref[...] += jnp.dot(a_ref[...], xw_ref[pl.ds(start, tk), :],
                            preferred_element_type=jnp.float32)

    @pl.when(k == pl.num_programs(1) - 1)
    def _():
        o_ref[...] = (acc_ref[...] + b_ref[...]).astype(o_ref.dtype)


# ----------------------------------------------------------------- wrappers

def _feature_transform(x_p, w_p):
    n_pad, c_in_p = x_p.shape
    c_out_p = w_p.shape[1]
    tm = _largest_divisor_tile(n_pad, (512, 256, 128))
    return pl.pallas_call(
        _transform_kernel,
        out_shape=jax.ShapeDtypeStruct((n_pad, c_out_p), jnp.bfloat16),
        grid=(n_pad // tm,),
        in_specs=[
            pl.BlockSpec((tm, c_in_p), lambda i: (i, 0)),
            pl.BlockSpec((c_in_p, c_out_p), lambda i: (0, 0)),
        ],
        out_specs=pl.BlockSpec((tm, c_out_p), lambda i: (i, 0)),
        compiler_params=pltpu.CompilerParams(
            dimension_semantics=("parallel",),
            vmem_limit_bytes=VMEM_LIMIT_BYTES),
        cost_estimate=pl.CostEstimate(
            flops=2 * n_pad * c_in_p * c_out_p,
            transcendentals=0,
            bytes_accessed=2 * (x_p.size + w_p.size + n_pad * c_out_p)),
    )(x_p, w_p)


def _fused3_forward(a_p, xw1, w2_p, w3_p, b1_p, b2_p, b3_p):
    """Single pallas_call: all three propagation layers with A resident in VMEM."""
    n_pad = a_p.shape[0]
    h_p, h2_p = w2_p.shape
    c_out_p = w3_p.shape[1]

    flops = (2 * n_pad * n_pad * (h_p + h2_p + c_out_p)
             + 2 * n_pad * (h_p * h2_p + h2_p * c_out_p))
    bytes_accessed = (2 * a_p.size + 2 * xw1.size + 2 * w2_p.size + 2 * w3_p.size
                      + 4 * (b1_p.size + b2_p.size + b3_p.size)
                      + 4 * n_pad * c_out_p)

    vmem = lambda: pl.BlockSpec(memory_space=pltpu.MemorySpace.VMEM)
    return pl.pallas_call(
        _fused3_kernel,
        out_shape=jax.ShapeDtypeStruct((n_pad, c_out_p), jnp.float32),
        in_specs=[vmem() for _ in range(7)],
        out_specs=vmem(),
        compiler_params=pltpu.CompilerParams(
            vmem_limit_bytes=VMEM_LIMIT_BYTES),
        cost_estimate=pl.CostEstimate(
            flops=flops, transcendentals=0, bytes_accessed=bytes_accessed),
    )(a_p, xw1, w2_p, w3_p, b1_p, b2_p, b3_p)


def _propagate(a_p, xw_p, b_p, w_next_p, tm, tk):
    """Streaming path (A does not fit in VMEM).
       If w_next_p is not None: out = relu(A @ XW + b) @ W_next   (bf16)
       else:                    out = A @ XW + b                  (f32)."""
    n_pad = a_p.shape[0]
    c = xw_p.shape[1]
    grid = (n_pad // tm, n_pad // tk)
    fused = w_next_p is not None
    c_next = w_next_p.shape[1] if fused else c

    in_specs = [
        pl.BlockSpec((tm, tk), lambda i, k: (i, k)),    # A tile (dominant stream)
        pl.BlockSpec((n_pad, c), lambda i, k: (0, 0)),  # XW resident (DMA'd once)
        pl.BlockSpec((1, c), lambda i, k: (0, 0)),      # bias (resident)
    ]
    args = [a_p, xw_p, b_p]
    if fused:
        in_specs.append(pl.BlockSpec((c, c_next), lambda i, k: (0, 0)))
        args.append(w_next_p)
        kernel, out_dtype = _prop_fused_kernel, jnp.bfloat16
    else:
        kernel, out_dtype = _prop_final_kernel, jnp.float32

    flops = 2 * n_pad * n_pad * c + (2 * n_pad * c * c_next if fused else 0)
    bytes_accessed = (2 * a_p.size + 2 * xw_p.size + 4 * b_p.size
                      + (2 * w_next_p.size if fused else 0)
                      + n_pad * c_next * (2 if fused else 4))

    return pl.pallas_call(
        kernel,
        out_shape=jax.ShapeDtypeStruct((n_pad, c_next), out_dtype),
        grid=grid,
        in_specs=in_specs,
        out_specs=pl.BlockSpec((tm, c_next), lambda i, k: (i, 0)),
        scratch_shapes=[pltpu.VMEM((tm, c), jnp.float32)],
        compiler_params=pltpu.CompilerParams(
            dimension_semantics=("parallel", "arbitrary"),
            vmem_limit_bytes=VMEM_LIMIT_BYTES),
        cost_estimate=pl.CostEstimate(
            flops=flops, transcendentals=0, bytes_accessed=bytes_accessed),
    )(*args)


# ----------------------------------------------------- prepare / forward API

def prepare_inputs(x, a_hat, params, force_path=None):
    """Pad to TPU-friendly shapes and cast to bf16 ONCE (hoisted out of the
    per-forward path so repeated forwards reuse the padded bf16 A_hat)."""
    w1, b1, w2, b2, w3, b3 = params
    n = x.shape[0]
    c_in, h = w1.shape
    h2 = w2.shape[1]
    c_out = w3.shape[1]

    c_in_p = _round_up(c_in, LANE)
    h_p = _round_up(h, LANE)
    h2_p = _round_up(h2, LANE)
    c_out_p = _round_up(c_out, LANE)

    # Path selection: keep A resident in VMEM when it (plus intermediates) fits,
    # otherwise fall back to streaming A with 512-wide row/col tiles.
    n128 = _round_up(max(n, 8), LANE)
    fused_bytes = 2 * n128 * n128 + 8 * n128 * (h_p + h2_p + c_out_p)
    path = "fused" if fused_bytes <= FUSED_VMEM_BUDGET else "stream"
    if force_path is not None:
        path = force_path

    if path == "fused":
        n_pad, tm, tk = n128, None, None
    else:
        n_pad = _round_up(max(n, 8), 512)   # never fall back to small A tiles
        tm = 512                            # >= 2 row tiles whenever streaming
        tk = _largest_divisor_tile(n_pad, (2048, 1024, 512))

    # TODO(synk): on v7x only, cast a_p (and xw) to float8_e4m3 for the MXU to
    # halve the dominant HBM stream; kept bf16 here for cross-generation safety.
    bf = jnp.bfloat16
    padded = dict(
        a=_pad2d(a_hat, n_pad, n_pad).astype(bf),
        x=_pad2d(x, n_pad, c_in_p).astype(bf),
        w1=_pad2d(w1, c_in_p, h_p).astype(bf),
        w2=_pad2d(w2, h_p, h2_p).astype(bf),
        w3=_pad2d(w3, h2_p, c_out_p).astype(bf),
        b1=_pad2d(b1, 1, h_p).astype(jnp.float32),
        b2=_pad2d(b2, 1, h2_p).astype(jnp.float32),
        b3=_pad2d(b3, 1, c_out_p).astype(jnp.float32),
    )
    meta = dict(n=n, c_out=c_out, path=path, tm=tm, tk=tk)
    return padded, meta


def improved_gcn_forward(padded, meta):
    """Eval-mode forward of ImprovedGCN on pre-padded, BN-folded inputs."""
    xw1 = _feature_transform(padded["x"], padded["w1"])          # X @ W1'
    if meta["path"] == "fused":
        out = _fused3_forward(padded["a"], xw1, padded["w2"], padded["w3"],
                              padded["b1"], padded["b2"], padded["b3"])
    else:
        tm, tk = meta["tm"], meta["tk"]
        xw2 = _propagate(padded["a"], xw1, padded["b1"], padded["w2"], tm, tk)
        xw3 = _propagate(padded["a"], xw2, padded["b2"], padded["w3"], tm, tk)
        out = _propagate(padded["a"], xw3, padded["b3"], None, tm, tk)
    return out[:meta["n"], :meta["c_out"]]


# ------------------------------------------------------------ params / glue

def build_a_hat(edge_index, num_nodes):
    """Dense D^{-1/2} (A + I) D^{-1/2} from edge_index [2, E] (src, dst).
    Duplicate edges are coalesced (max instead of add), matching PyG."""
    src, dst = edge_index[0], edge_index[1]
    adj = jnp.zeros((num_nodes, num_nodes), jnp.float32)
    adj = adj.at[dst, src].max(1.0)
    adj = adj + jnp.eye(num_nodes, dtype=jnp.float32)
    deg = adj.sum(axis=1)
    dinv = jnp.where(deg > 0, 1.0 / jnp.sqrt(deg), 0.0)
    return dinv[:, None] * adj * dinv[None, :]


def glorot(key, fan_in, fan_out):
    limit = math.sqrt(6.0 / (fan_in + fan_out))
    return jax.random.uniform(key, (fan_in, fan_out), jnp.float32, -limit, limit)


def fold_bn(w, b, gamma, beta, mean, var, eps=1e-5):
    """Fold eval-mode BatchNorm1d into the preceding GCNConv weight/bias."""
    scale = gamma / jnp.sqrt(var + eps)
    return w * scale[None, :], b * scale[None, :] + (beta - mean * scale)[None, :]


def init_params(key, in_channels, hidden_channels=32, out_channels=64):
    k1, k2, k3 = jax.random.split(key, 3)
    h, h2 = hidden_channels, hidden_channels * 2

    w1, b1 = glorot(k1, in_channels, h), jnp.zeros((1, h), jnp.float32)
    w2, b2 = glorot(k2, h, h2), jnp.zeros((1, h2), jnp.float32)
    w3, b3 = glorot(k3, h2, out_channels), jnp.zeros((1, out_channels), jnp.float32)

    # BatchNorm1d eval-mode defaults: gamma=1, beta=0, running_mean=0, running_var=1
    w1f, b1f = fold_bn(w1, b1, jnp.ones((h,)), jnp.zeros((h,)),
                       jnp.zeros((h,)), jnp.ones((h,)))
    w2f, b2f = fold_bn(w2, b2, jnp.ones((h2,)), jnp.zeros((h2,)),
                       jnp.zeros((h2,)), jnp.ones((h2,)))
    return (w1f, b1f, w2f, b2f, w3, b3)


# ----------------------------------------------------------------- references

def reference_forward_f32(x, a_hat, params):
    w1, b1, w2, b2, w3, b3 = params
    h = jnp.maximum(a_hat @ (x @ w1) + b1, 0.0)
    h = jnp.maximum(a_hat @ (h @ w2) + b2, 0.0)
    return a_hat @ (h @ w3) + b3


def reference_forward_bf16(x, a_hat, params):
    """Mirrors the kernel's bf16 operand casts (f32 accumulation)."""
    w1, b1, w2, b2, w3, b3 = params
    bf = jnp.bfloat16

    def mm(p, q):
        return jnp.dot(p.astype(bf), q.astype(bf),
                       preferred_element_type=jnp.float32)

    xw1 = mm(x, w1).astype(bf)
    h1 = jnp.maximum(mm(a_hat, xw1) + b1, 0.0)
    xw2 = mm(h1, w2).astype(bf)
    h2 = jnp.maximum(mm(a_hat, xw2) + b2, 0.0)
    xw3 = mm(h2, w3).astype(bf)
    return mm(a_hat, xw3) + b3


if __name__ == "__main__":
    key = jax.random.PRNGKey(0)
    k_x, k_p = jax.random.split(key)

    num_nodes = 8
    in_channels = 4

    # node features [N, C_in]
    x = jax.random.normal(k_x, (num_nodes, in_channels), jnp.float32)

    # bidirectional ring graph: edge_index [2, 16]
    idx = jnp.arange(num_nodes, dtype=jnp.int32)
    nxt = (idx + 1) % num_nodes
    edge_index = jnp.stack([jnp.concatenate([idx, nxt]),
                            jnp.concatenate([nxt, idx])], axis=0)

    a_hat = build_a_hat(edge_index, num_nodes)
    params = init_params(k_p, in_channels)

    ref_bf = reference_forward_bf16(x, a_hat, params)   # exact cast-matched ref
    ref_f32 = reference_forward_f32(x, a_hat, params)   # full-precision semantic ref

    # Default path for this graph size: A-resident fused kernel.
    padded, meta = prepare_inputs(x, a_hat, params)
    assert meta["path"] == "fused"
    out = jax.block_until_ready(improved_gcn_forward(padded, meta))
    assert out.shape == (num_nodes, 64)
    assert jnp.allclose(out, ref_bf, atol=2e-3, rtol=2e-3)
    assert jnp.allclose(out, ref_f32, atol=5e-2, rtol=5e-2)

    # Streaming fallback (used when A_hat does not fit in VMEM): smoke test.
    padded_s, meta_s = prepare_inputs(x, a_hat, params, force_path="stream")
    out_s = jax.block_until_ready(improved_gcn_forward(padded_s, meta_s))
    assert out_s.shape == (num_nodes, 64)
    assert jnp.allclose(out_s, ref_bf, atol=2e-3, rtol=2e-3)
    assert jnp.allclose(out_s, ref_f32, atol=5e-2, rtol=5e-2)

    print("KERNEL_OK")
</pallas_src>

<mosaic_0001>
module attributes {stable_mosaic.version = 11 : i64} {
  func.func @_transform_kernel(%arg0: i32, %arg1: memref<128x128xbf16, #tpu.memory_space<vmem>>, %arg2: memref<128x128xbf16, #tpu.memory_space<vmem>>, %arg3: memref<128x128xbf16, #tpu.memory_space<vmem>>) attributes {dimension_semantics = [#tpu.dimension_semantics<parallel>], iteration_bounds = array<i64: 1>, scalar_prefetch = 0 : i64, scratch_operands = 0 : i64, tpu.core_type = #tpu.core_type<tc>, window_params = [{transform_indices = @transform_0, window_bounds = array<i64: 128, 128>}, {pipeline_mode = #tpu.pipeline_mode<synchronous>, transform_indices = @transform_1, window_bounds = array<i64: 128, 128>}, {transform_indices = @transform_2, window_bounds = array<i64: 128, 128>}]} {
    %c0 = arith.constant 0 : index
    %c0_0 = arith.constant 0 : index
    %0 = vector.load %arg1[%c0, %c0_0] : memref<128x128xbf16, #tpu.memory_space<vmem>>, vector<128x128xbf16>
    %c0_1 = arith.constant 0 : index
    %c0_2 = arith.constant 0 : index
    %1 = vector.load %arg2[%c0_1, %c0_2] : memref<128x128xbf16, #tpu.memory_space<vmem>>, vector<128x128xbf16>
    %cst = arith.constant dense<0.000000e+00> : vector<128x128xf32>
    %2 = tpu.matmul %0, %1, %cst {dimension_numbers = #tpu.dot_dimension_numbers<[1], [0], [0], [1], [0, 0, 1, 1], [], []>} : vector<128x128xbf16>, vector<128x128xbf16>, vector<128x128xf32> -> vector<128x128xf32>
    %3 = arith.truncf %2 : vector<128x128xf32> to vector<128x128xbf16>
    %c0_3 = arith.constant 0 : index
    %c0_4 = arith.constant 0 : index
    %4 = vector.load %arg3[%c0_3, %c0_4] : memref<128x128xbf16, #tpu.memory_space<vmem>>, vector<128x128xbf16>
    tpu.vector_store %arg3[%c0_3, %c0_4], %3 {strides = array<i32>} : memref<128x128xbf16, #tpu.memory_space<vmem>>, vector<128x128xbf16>,
    return
  }
  func.func @transform_0(%arg0: i32) -> (i32, i32) {
    %c0_i32 = arith.constant 0 : i32
    %c0_i32_0 = arith.constant 0 : i32
    return %arg0, %c0_i32 : i32, i32
  }
  func.func @transform_1(%arg0: i32) -> (i32, i32) {
    %c0_i32 = arith.constant 0 : i32
    %c0_i32_0 = arith.constant 0 : i32
    %c0_i32_1 = arith.constant 0 : i32
    return %c0_i32, %c0_i32_0 : i32, i32
  }
  func.func @transform_2(%arg0: i32) -> (i32, i32) {
    %c0_i32 = arith.constant 0 : i32
    %c0_i32_0 = arith.constant 0 : i32
    return %arg0, %c0_i32 : i32, i32
  }
}

</mosaic_0001>

<bundles_post_ra>
// kernel: tpu_custom_call.1
= control target key start
LH: loop header
LB: loop body
LE: loop exit
PB: predicated region body
PF: predicated region fallthrough
CT: control target
= control target key end

     0   :  { %7 = vsyncpa [#allocation3], 0  ;;  %s545_s0 = inlined_call_operand.hbm [shape: bf16[128,128], index: 0, kind: input, shape index: {}]   ;;  %s546_s1 = inlined_call_operand.hbm [shape: bf16[128,128], index: 1, kind: input, shape index: {}]   ;;  %s547_s2 = inlined_call_operand.hbm [shape: bf16[128,128], index: 2, kind: output, shape index: {}]  }
   0x1   :  { %8 = vsyncpa [#allocation6], 0 }
   0x2   :  { %9 = vsyncpa [#allocation4], 0  ;;  %s14_s11 = sshll.u32 %s545_s0, 4  ;;  %s507_s12 = smov [#allocation2]   ;;  %s15_s11 = int_to_ptr.hbm [resolvable:$true] %s14_s11 }
   0x3   :  { %s16_s13 = sshll.u32 %s507_s12, 4  ;;  %s27_s16 = sshll.u32 %s546_s1, 4  ;;  %s17_s13 = int_to_ptr.vmem [resolvable:$true] %s16_s13  ;;  %s28_s16 = int_to_ptr.hbm [resolvable:$true] %s27_s16 }
   0x4   :  { %s508_s17 = smov 64   ;;  %s509_s18 = smov 4  }
   0x5   :  { %22 = dma.hbm_to_vmem [thread:$0]  %s15_s11, 1024, %s17_s13, [#allocation3], %s508_s17, %s508_s17, %s509_s18  }
   0x6   :  { %s510_s19 = smov [#allocation5]  }
   0x7   :  { %s29_s20 = sshll.u32 %s510_s19, 4  ;;  %s30_s20 = int_to_ptr.vmem [resolvable:$true] %s29_s20 }
   0x8   :  { %35 = dma.hbm_to_vmem [thread:$0]  %s28_s16, 1024, %s30_s20, [#allocation6], %s508_s17, %s508_s17, %s509_s18  }
   0x9   :  { %501 = dma.done.wait [#allocation3], 1024  }
   0xa   :  { %502 = vsyncadd [#allocation3], 4294966272 }
   0xb   :  { %503 = dma.done.wait [#allocation6], 1024  }
   0xc   :  { %504 = vsyncadd [#allocation6], 4294966272  ;;  %v352_v0 = vld [vmem:[#allocation5 + $0x38] sm:$0xff]  ;;  %v351_v1 = vld [vmem:[#allocation5 + $0x30] sm:$0xff]  ;;  %s511_s0 = smov [#allocation7]   ;;  %s259_s23 = sshll.u32 %s547_s2, 4  ;;  %s260_s23 = int_to_ptr.hbm [resolvable:$true] %s259_s23 }
   0xd   :  { %172 = vmatpush.bf16.msra.mxu0 %v352_v0  ;;  %400 = vmatpush.bf16.msra.mxu1 %v352_v0  ;;  %v350_v2 = vld [vmem:[#allocation5 + $0x28] sm:$0xff]  ;;  %v349_v3 = vld [vmem:[#allocation5 + $0x20] sm:$0xff]  ;;  %v348_v4 = vld [vmem:[#allocation5 + $0x18] sm:$0xff]  ;;  %s257_s1 = sshll.u32 %s511_s0, 4  ;;  %s258_s1 = int_to_ptr.vmem [resolvable:$true] %s257_s1 }
   0xe   :  { %401 = vmatpush.bf16.msra.mxu2 %v352_v0  ;;  %402 = vmatpush.bf16.msra.mxu3 %v352_v0  ;;  %v347_v5 = vld [vmem:[#allocation5 + $0x10] sm:$0xff]  ;;  %v346_v6 = vld [vmem:[#allocation5 + $0x8] sm:$0xff]  ;;  %v345_v7 = vld [vmem:[#allocation5] sm:$0xff] }
   0xf   :  { %v337_v8 = vld [vmem:[#allocation2] sm:$0xff]  ;;  %v339_v9 = vld [vmem:[#allocation2 + $0x10] sm:$0xff]  ;;  %v338_v12 = vld [vmem:[#allocation2 + $0x8] sm:$0xff] }
  0x10   :  { %v341_v10 = vld [vmem:[#allocation2 + $0x20] sm:$0xff]  ;;  %v343_v11 = vld [vmem:[#allocation2 + $0x30] sm:$0xff]  ;;  %v340_v13 = vld [vmem:[#allocation2 + $0x18] sm:$0xff] }
  0x11   :  { %173 = vmatpush.bf16.msra.mxu0 %v351_v1  ;;  %403 = vmatpush.bf16.msra.mxu1 %v351_v1  ;;  %v342_v14 = vld [vmem:[#allocation2 + $0x28] sm:$0xff]  ;;  %v344_v15 = vld [vmem:[#allocation2 + $0x38] sm:$0xff] }
  0x12   :  { %404 = vmatpush.bf16.msra.mxu2 %v351_v1  ;;  %405 = vmatpush.bf16.msra.mxu3 %v351_v1 }
  0x15   :  { %174 = vmatpush.bf16.msra.mxu0 %v350_v2  ;;  %406 = vmatpush.bf16.msra.mxu1 %v350_v2 }
  0x16   :  { %407 = vmatpush.bf16.msra.mxu2 %v350_v2  ;;  %408 = vmatpush.bf16.msra.mxu3 %v350_v2 }
  0x19   :  { %175 = vmatpush.bf16.msra.mxu0 %v349_v3  ;;  %409 = vmatpush.bf16.msra.mxu1 %v349_v3 }
  0x1a   :  { %410 = vmatpush.bf16.msra.mxu2 %v349_v3  ;;  %411 = vmatpush.bf16.msra.mxu3 %v349_v3 }
  0x1d   :  { %176 = vmatpush.bf16.msra.mxu0 %v348_v4  ;;  %412 = vmatpush.bf16.msra.mxu1 %v348_v4 }
  0x1e   :  { %413 = vmatpush.bf16.msra.mxu2 %v348_v4  ;;  %414 = vmatpush.bf16.msra.mxu3 %v348_v4 }
  0x21   :  { %177 = vmatpush.bf16.msra.mxu0 %v347_v5  ;;  %415 = vmatpush.bf16.msra.mxu1 %v347_v5 }
  0x22   :  { %416 = vmatpush.bf16.msra.mxu2 %v347_v5  ;;  %417 = vmatpush.bf16.msra.mxu3 %v347_v5 }
  0x25   :  { %178 = vmatpush.bf16.msra.mxu0 %v346_v6  ;;  %418 = vmatpush.bf16.msra.mxu1 %v346_v6 }
  0x26   :  { %419 = vmatpush.bf16.msra.mxu2 %v346_v6  ;;  %420 = vmatpush.bf16.msra.mxu3 %v346_v6 }
  0x29   :  { %179 = vmatpush.bf16.msra.mxu0 %v345_v7  ;;  %421 = vmatpush.bf16.msra.mxu1 %v345_v7 }
  0x2a   :  { %422 = vmatpush.bf16.msra.mxu2 %v345_v7  ;;  %423 = vmatpush.bf16.msra.mxu3 %v345_v7 }
  0x2c   :  { %180 = vmatmul.bf16.vlgmr.msra.gmra.mxu0 %v337_v8  ;;  %190 = vmatmul.bf16.vlgmr.msra.gmra.mxu1 %v339_v9 }
  0x2d   :  { %200 = vmatmul.bf16.vlgmr.msra.gmra.mxu2 %v341_v10  ;;  %210 = vmatmul.bf16.vlgmr.msra.gmra.mxu3 %v343_v11 }
  0x3c   :  { %185 = vmatmul.bf16.gmra.mxu0 %v338_v12  ;;  %195 = vmatmul.bf16.gmra.mxu1 %v340_v13 }
  0x3d   :  { %205 = vmatmul.bf16.gmra.mxu2 %v342_v14  ;;  %215 = vmatmul.bf16.gmra.mxu3 %v344_v15 }
  0xa9   :  { %v181_v16 = vpop.f32.mrf.mxu0  ;;  %v191_v17 = vpop.f32.mrf.mxu1 }
  0xb0   :  { %v201_v18 = vpop.f32.mrf.mxu2  ;;  %v211_v19 = vpop.f32.mrf.mxu3 }
  0xb1   :  { %v183_v20 = vpop.f32.mrf.mxu0  ;;  %v193_v21 = vpop.f32.mrf.mxu1 }
  0xb2   :  { %v356_v22 = vpack.c.bf16 %v183_v20, %v181_v16  ;;  %v366_v23 = vpack.c.bf16 %v193_v21, %v191_v17 }
  0xb4   :  { %357 = vst [vmem:[#allocation7] sm:$0xff] %v356_v22  }
  0xb5   :  { %394 = vst [vmem:[#allocation7 + $0x10] sm:$0xff] %v366_v23  }
  0xb8   :  { %v203_v24 = vpop.f32.mrf.mxu2  ;;  %v213_v25 = vpop.f32.mrf.mxu3 }
  0xb9   :  { %v376_v26 = vpack.c.bf16 %v203_v24, %v201_v18  ;;  %v386_v27 = vpack.c.bf16 %v213_v25, %v211_v19  ;;  %v186_v28 = vpop.f32.mrf.mxu0  ;;  %v196_v29 = vpop.f32.mrf.mxu1 }
  0xbb   :  { %396 = vst [vmem:[#allocation7 + $0x20] sm:$0xff] %v376_v26  }
  0xbc   :  { %398 = vst [vmem:[#allocation7 + $0x30] sm:$0xff] %v386_v27  }
  0xc0   :  { %v206_v30 = vpop.f32.mrf.mxu2  ;;  %v216_v31 = vpop.f32.mrf.mxu3 }
  0xc1   :  { %v188_v32 = vpop.f32.mrf.mxu0  ;;  %v198_v33 = vpop.f32.mrf.mxu1 }
  0xc2   :  { %v361_v34 = vpack.c.bf16 %v188_v32, %v186_v28  ;;  %v371_v35 = vpack.c.bf16 %v198_v33, %v196_v29 }
  0xc4   :  { %393 = vst [vmem:[#allocation7 + $0x8] sm:$0xff] %v361_v34  }
  0xc5   :  { %395 = vst [vmem:[#allocation7 + $0x18] sm:$0xff] %v371_v35  }
  0xc8   :  { %v208_v36 = vpop.f32.mrf.mxu2  ;;  %v218_v37 = vpop.f32.mrf.mxu3 }
  0xc9   :  { %v381_v38 = vpack.c.bf16 %v208_v36, %v206_v30  ;;  %v391_v39 = vpack.c.bf16 %v218_v37, %v216_v31 }
  0xcb   :  { %397 = vst [vmem:[#allocation7 + $0x28] sm:$0xff] %v381_v38  }
  0xcc   :  { %399 = vst [vmem:[#allocation7 + $0x38] sm:$0xff] %v391_v39  }
  0xcd   :  { %265 = dma.vmem_to_hbm [thread:$0]  %s258_s1, 1024, %s260_s23, [#allocation4], %s508_s17, %s508_s17, %s509_s18  }
  0xce   :  { %505 = dma.done.wait [#allocation4], 1024  }
  0xcf   :  { %506 = vsyncadd [#allocation4], 4294966272 }
  0xd0   :  { %270 = vsyncpa [#allocation3], 1 }
  0xd1   :  { %271 = vsyncpa [#allocation6], 1 }
  0xd2   :  { %272 = vsyncpa [#allocation4], 1 }

</bundles_post_ra>
